<compile_context>
chip_gen: v5e
topology: v5e:2x2
jax: 0.10.0
libtpu: 0.0.40
codegen_flags: <defaults>
</compile_context>

<pallas_src>
import functools

import jax
import jax.numpy as jnp
from jax.experimental import pallas as pl
from jax.experimental.pallas import tpu as pltpu


def _round_up(a: int, b: int) -> int:
    return ((a + b - 1) // b) * b


_VMEM_BUDGET = 32 * 1024 * 1024  # conservative: v7x scoped-VMEM default


def _choose_tiles(m: int, kp: int, npad: int, tm_target: int):
    """Pick (TM, TK): TM multiple of 8, TK multiple of 128 dividing kp,
    such that the working set fits the VMEM budget."""
    tm = min(tm_target, _round_up(max(m, 1), 8))
    tk = kp

    def vmem_bytes(tm_: int, tk_: int) -> int:
        return 4 * (2 * tm_ * tk_        # double-buffered x tile
                    + 2 * npad * tk_     # double-buffered weight tile
                    + 2 * tm_ * npad     # double-buffered output tile
                    + tm_ * npad         # f32 accumulator scratch
                    + 2 * npad)          # bias

    # Shrink the K tile first (keeps the lane-dense M x N output tile large and
    # minimizes weight re-fetches across M tiles), then shrink TM if needed.
    while tk > 128 and vmem_bytes(tm, tk) > _VMEM_BUDGET:
        tk -= 128
        while kp % tk:                   # keep TK an exact divisor of kp
            tk -= 128
    while tm > 8 and vmem_bytes(tm, tk) > _VMEM_BUDGET:
        tm = max(8, _round_up(tm // 2, 8))
    return tm, tk


def _linear_kernel(x_ref, w_ref, b_ref, o_ref, acc_ref):
    # x_ref: (TM, TK)   w_ref: (Np, TK) -- PyTorch (out, in) layout, no transpose
    # b_ref: (1, Np)    o_ref: (TM, Np) acc_ref: (TM, Np) f32 scratch
    k = pl.program_id(1)

    @pl.when(k == 0)
    def _():
        acc_ref[...] = jnp.zeros_like(acc_ref)

    acc_ref[...] += jax.lax.dot_general(
        x_ref[...], w_ref[...],
        dimension_numbers=(((1,), (1,)), ((), ())),   # contract the "in" axis
        preferred_element_type=jnp.float32)

    @pl.when(k == pl.num_programs(1) - 1)
    def _():
        o_ref[...] = (acc_ref[...] + b_ref[...]).astype(o_ref.dtype)


@functools.partial(jax.jit, static_argnames=("tm_target",))
def linear_attention_forward(x, weight, bias, *, tm_target=1024):
    """x: (..., embed_dim); weight: (embed_dim, embed_dim) in PyTorch (out, in)
    layout; bias: (embed_dim,). Returns (..., embed_dim) float32."""
    x = jnp.asarray(x, jnp.float32)
    embed_dim = int(x.shape[-1])
    lead_shape = x.shape[:-1]
    m = 1
    for d in lead_shape:
        m *= int(d)

    kp = _round_up(embed_dim, 128)     # padded "in" dim  (lane-dense loads)
    npad = _round_up(embed_dim, 128)   # padded "out" dim (lane-dense stores)
    tm, tk = _choose_tiles(m, kp, npad, tm_target)
    mp = _round_up(max(m, 1), tm)

    x2d = x.reshape(m, embed_dim)
    if (mp - m) or (kp - embed_dim):
        x2d = jnp.pad(x2d, ((0, mp - m), (0, kp - embed_dim)))

    w = jnp.asarray(weight, jnp.float32)               # (N, K), kept untransposed
    if (npad - embed_dim) or (kp - embed_dim):
        w = jnp.pad(w, ((0, npad - embed_dim), (0, kp - embed_dim)))

    b2d = jnp.asarray(bias, jnp.float32).reshape(1, embed_dim)
    if npad - embed_dim:
        b2d = jnp.pad(b2d, ((0, 0), (0, npad - embed_dim)))

    gm = mp // tm
    gk = kp // tk
    grid = (gm, gk)

    vmem_need = 4 * (2 * tm * tk + 2 * npad * tk + 2 * tm * npad
                     + tm * npad + 2 * npad)
    vmem_limit = int(min(max(vmem_need + (8 << 20), 16 << 20), 48 << 20))

    cost = pl.CostEstimate(
        flops=2 * mp * kp * npad,
        transcendentals=0,
        bytes_accessed=4 * (mp * kp + gm * kp * npad + npad + mp * npad))

    out2d = pl.pallas_call(
        _linear_kernel,
        out_shape=jax.ShapeDtypeStruct((mp, npad), jnp.float32),
        grid=grid,
        in_specs=[
            pl.BlockSpec((tm, tk), lambda i, k: (i, k)),    # streamed x tiles
            pl.BlockSpec((npad, tk), lambda i, k: (0, k)),  # weight K-slices
            pl.BlockSpec((1, npad), lambda i, k: (0, 0)),   # resident bias
        ],
        out_specs=pl.BlockSpec((tm, npad), lambda i, k: (i, 0)),
        scratch_shapes=[pltpu.VMEM((tm, npad), jnp.float32)],
        compiler_params=pltpu.CompilerParams(
            dimension_semantics=("parallel", "arbitrary"),
            vmem_limit_bytes=vmem_limit),
        cost_estimate=cost,
    )(x2d, w, b2d)

    out = out2d[:m, :embed_dim].reshape(*lead_shape, embed_dim)
    return out


if __name__ == "__main__":
    # Small deterministic example: batch=2, seq=8, embed_dim=32.
    embed_dim = 32
    key = jax.random.PRNGKey(0)
    kx, kw, kb = jax.random.split(key, 3)

    x = jax.random.normal(kx, (2, 8, embed_dim), dtype=jnp.float32)

    # Deterministic param init mimicking nn.Linear's uniform(-1/sqrt(K), 1/sqrt(K)).
    bound = 1.0 / (embed_dim ** 0.5)
    weight = jax.random.uniform(
        kw, (embed_dim, embed_dim), minval=-bound, maxval=bound,
        dtype=jnp.float32)                       # PyTorch layout: (out, in)
    bias = jax.random.uniform(
        kb, (embed_dim,), minval=-bound, maxval=bound, dtype=jnp.float32)

    out = linear_attention_forward(x, weight, bias)
    jax.block_until_ready(out)

    # Cross-check against plain-JAX reference of the same math.
    ref = x @ weight.T + bias
    assert out.shape == (2, 8, embed_dim)
    assert jnp.allclose(out, ref, atol=2e-5, rtol=2e-5)

    print("KERNEL_OK")
</pallas_src>

<mosaic_0001>
module attributes {stable_mosaic.version = 11 : i64} {
  func.func @_linear_kernel(%arg0: i32, %arg1: i32, %arg2: memref<16x128xf32, #tpu.memory_space<vmem>>, %arg3: memref<128x128xf32, #tpu.memory_space<vmem>>, %arg4: memref<1x128xf32, #tpu.memory_space<vmem>>, %arg5: memref<16x128xf32, #tpu.memory_space<vmem>>, %arg6: memref<16x128xf32, #tpu.memory_space<vmem>>) attributes {dimension_semantics = [#tpu.dimension_semantics<parallel>, #tpu.dimension_semantics<arbitrary>], iteration_bounds = array<i64: 1, 1>, scalar_prefetch = 0 : i64, scratch_operands = 1 : i64, tpu.core_type = #tpu.core_type<tc>, window_params = [{transform_indices = @transform_0, window_bounds = array<i64: 16, 128>}, {transform_indices = @transform_1, window_bounds = array<i64: 128, 128>}, {pipeline_mode = #tpu.pipeline_mode<synchronous>, transform_indices = @transform_2, window_bounds = array<i64: 1, 128>}, {transform_indices = @transform_3, window_bounds = array<i64: 16, 128>}]} {
    %c0_i32 = arith.constant 0 : i32
    %0 = arith.cmpi eq, %arg1, %c0_i32 : i32
    %1 = arith.extui %0 : i1 to i32
    %c0_i32_0 = arith.constant 0 : i32
    %2 = arith.cmpi ne, %1, %c0_i32_0 : i32
    scf.if %2 {
      %cst_10 = arith.constant 0.000000e+00 : f32
      %12 = vector.broadcast %cst_10 : f32 to vector<16x128xf32>
      %c0_11 = arith.constant 0 : index
      %c0_12 = arith.constant 0 : index
      %13 = vector.load %arg6[%c0_11, %c0_12] : memref<16x128xf32, #tpu.memory_space<vmem>>, vector<16x128xf32>
      tpu.vector_store %arg6[%c0_11, %c0_12], %12 {strides = array<i32>} : memref<16x128xf32, #tpu.memory_space<vmem>>, vector<16x128xf32>,
    } else {
    }
    %c0 = arith.constant 0 : index
    %c0_1 = arith.constant 0 : index
    %3 = vector.load %arg6[%c0, %c0_1] : memref<16x128xf32, #tpu.memory_space<vmem>>, vector<16x128xf32>
    %c0_2 = arith.constant 0 : index
    %c0_3 = arith.constant 0 : index
    %4 = vector.load %arg2[%c0_2, %c0_3] : memref<16x128xf32, #tpu.memory_space<vmem>>, vector<16x128xf32>
    %c0_4 = arith.constant 0 : index
    %c0_5 = arith.constant 0 : index
    %5 = vector.load %arg3[%c0_4, %c0_5] : memref<128x128xf32, #tpu.memory_space<vmem>>, vector<128x128xf32>
    %cst = arith.constant dense<0.000000e+00> : vector<16x128xf32>
    %6 = tpu.matmul %4, %5, %cst {dimension_numbers = #tpu.dot_dimension_numbers<[1], [1], [0], [0], [0, 0, 1, 0], [], []>} : vector<16x128xf32>, vector<128x128xf32>, vector<16x128xf32> -> vector<16x128xf32>
    %7 = arith.addf %3, %6 : vector<16x128xf32>
    %c0_6 = arith.constant 0 : index
    %c0_7 = arith.constant 0 : index
    %8 = vector.load %arg6[%c0_6, %c0_7] : memref<16x128xf32, #tpu.memory_space<vmem>>, vector<16x128xf32>
    tpu.vector_store %arg6[%c0_6, %c0_7], %7 {strides = array<i32>} : memref<16x128xf32, #tpu.memory_space<vmem>>, vector<16x128xf32>,
    %c0_i32_8 = arith.constant 0 : i32
    %9 = arith.cmpi eq, %arg1, %c0_i32_8 : i32
    %10 = arith.extui %9 : i1 to i32
    %c0_i32_9 = arith.constant 0 : i32
    %11 = arith.cmpi ne, %10, %c0_i32_9 : i32
    scf.if %11 {
      %c0_10 = arith.constant 0 : index
      %c0_11 = arith.constant 0 : index
      %12 = vector.load %arg6[%c0_10, %c0_11] : memref<16x128xf32, #tpu.memory_space<vmem>>, vector<16x128xf32>
      %c0_12 = arith.constant 0 : index
      %c0_13 = arith.constant 0 : index
      %13 = vector.load %arg4[%c0_12, %c0_13] : memref<1x128xf32, #tpu.memory_space<vmem>>, vector<1x128xf32>
      %14 = vector.broadcast %13 : vector<1x128xf32> to vector<16x128xf32>
      %15 = arith.addf %12, %14 : vector<16x128xf32>
      %c0_14 = arith.constant 0 : index
      %c0_15 = arith.constant 0 : index
      %16 = vector.load %arg5[%c0_14, %c0_15] : memref<16x128xf32, #tpu.memory_space<vmem>>, vector<16x128xf32>
      tpu.vector_store %arg5[%c0_14, %c0_15], %15 {strides = array<i32>} : memref<16x128xf32, #tpu.memory_space<vmem>>, vector<16x128xf32>,
    } else {
    }
    return
  }
  func.func @transform_0(%arg0: i32, %arg1: i32) -> (i32, i32) {
    %c0_i32 = arith.constant 0 : i32
    return %arg0, %arg1 : i32, i32
  }
  func.func @transform_1(%arg0: i32, %arg1: i32) -> (i32, i32) {
    %c0_i32 = arith.constant 0 : i32
    %c0_i32_0 = arith.constant 0 : i32
    return %c0_i32, %arg1 : i32, i32
  }
  func.func @transform_2(%arg0: i32, %arg1: i32) -> (i32, i32) {
    %c0_i32 = arith.constant 0 : i32
    %c0_i32_0 = arith.constant 0 : i32
    %c0_i32_1 = arith.constant 0 : i32
    return %c0_i32, %c0_i32_0 : i32, i32
  }
  func.func @transform_3(%arg0: i32, %arg1: i32) -> (i32, i32) {
    %c0_i32 = arith.constant 0 : i32
    %c0_i32_0 = arith.constant 0 : i32
    return %arg0, %c0_i32 : i32, i32
  }
}

</mosaic_0001>

<bundles_post_ra>
// kernel: linear_attention_forward.1
= control target key start
LH: loop header
LB: loop body
LE: loop exit
PB: predicated region body
PF: predicated region fallthrough
CT: control target
= control target key end

     0   :  { %s184_s1 = inlined_call_operand.vmem [shape: f32[128,128], index: 1, kind: input, shape index: {}]   ;;  %s185_s2 = inlined_call_operand.vmem [shape: f32[1,128], index: 2, kind: input, shape index: {}]   ;;  %s186_s0 = inlined_call_operand.vmem [shape: f32[16,128], index: 0, kind: input, shape index: {}]   ;;  %s187_s3 = inlined_call_operand.vmem [shape: f32[16,128], index: 3, kind: output, shape index: {}]  }
   0x1   :  { %v39_v0 = vld [vmem:[%s184_s1 + $0x78] sm:$0xff]  ;;  %v38_v1 = vld [vmem:[%s184_s1 + $0x70] sm:$0xff]  ;;  %v37_v2 = vld [vmem:[%s184_s1 + $0x68] sm:$0xff] }
   0x2   :  { %40 = vmatpush.xpose.msra.mxu0 %v39_v0  ;;  %84 = vmatpush.xpose.msra.mxu1 %v39_v0  ;;  %v36_v3 = vld [vmem:[%s184_s1 + $0x60] sm:$0xff]  ;;  %v35_v4 = vld [vmem:[%s184_s1 + $0x58] sm:$0xff]  ;;  %v34_v5 = vld [vmem:[%s184_s1 + $0x50] sm:$0xff] }
   0x3   :  { %v33_v6 = vld [vmem:[%s184_s1 + $0x48] sm:$0xff]  ;;  %v32_v7 = vld [vmem:[%s184_s1 + $0x40] sm:$0xff]  ;;  %v31_v8 = vld [vmem:[%s184_s1 + $0x38] sm:$0xff] }
   0x4   :  { %v30_v9 = vld [vmem:[%s184_s1 + $0x30] sm:$0xff]  ;;  %v29_v10 = vld [vmem:[%s184_s1 + $0x28] sm:$0xff]  ;;  %v28_v11 = vld [vmem:[%s184_s1 + $0x20] sm:$0xff] }
   0x5   :  { %v27_v12 = vld [vmem:[%s184_s1 + $0x18] sm:$0xff]  ;;  %v26_v13 = vld [vmem:[%s184_s1 + $0x10] sm:$0xff]  ;;  %v25_v14 = vld [vmem:[%s184_s1 + $0x8] sm:$0xff] }
   0x6   :  { %41 = vmatpush.xpose.msra.mxu0 %v38_v1  ;;  %85 = vmatpush.xpose.msra.mxu1 %v38_v1  ;;  %v24_v15 = vld [vmem:[%s184_s1] sm:$0xff]  ;;  %v23_v17 = vld [vmem:[%s186_s0 + $0x8] sm:$0xff] }
   0x7   :  { %v22_v16 = vld [vmem:[%s186_s0] sm:$0xff] }
   0x8   :  { %v100_v18 = vld [vmem:[%s185_s2] ss:$0 sm:$0xff] }
   0xa   :  { %42 = vmatpush.xpose.msra.mxu0 %v37_v2  ;;  %86 = vmatpush.xpose.msra.mxu1 %v37_v2 }
   0xe   :  { %43 = vmatpush.xpose.msra.mxu0 %v36_v3  ;;  %87 = vmatpush.xpose.msra.mxu1 %v36_v3 }
  0x12   :  { %44 = vmatpush.xpose.msra.mxu0 %v35_v4  ;;  %88 = vmatpush.xpose.msra.mxu1 %v35_v4 }
  0x16   :  { %45 = vmatpush.xpose.msra.mxu0 %v34_v5  ;;  %89 = vmatpush.xpose.msra.mxu1 %v34_v5 }
  0x1a   :  { %46 = vmatpush.xpose.msra.mxu0 %v33_v6  ;;  %90 = vmatpush.xpose.msra.mxu1 %v33_v6 }
  0x1e   :  { %47 = vmatpush.xpose.msra.mxu0 %v32_v7  ;;  %91 = vmatpush.xpose.msra.mxu1 %v32_v7 }
  0x22   :  { %48 = vmatpush.xpose.msra.mxu0 %v31_v8  ;;  %92 = vmatpush.xpose.msra.mxu1 %v31_v8 }
  0x26   :  { %49 = vmatpush.xpose.msra.mxu0 %v30_v9  ;;  %93 = vmatpush.xpose.msra.mxu1 %v30_v9 }
  0x2a   :  { %50 = vmatpush.xpose.msra.mxu0 %v29_v10  ;;  %94 = vmatpush.xpose.msra.mxu1 %v29_v10 }
  0x2e   :  { %51 = vmatpush.xpose.msra.mxu0 %v28_v11  ;;  %95 = vmatpush.xpose.msra.mxu1 %v28_v11 }
  0x32   :  { %52 = vmatpush.xpose.msra.mxu0 %v27_v12  ;;  %96 = vmatpush.xpose.msra.mxu1 %v27_v12 }
  0x36   :  { %53 = vmatpush.xpose.msra.mxu0 %v26_v13  ;;  %97 = vmatpush.xpose.msra.mxu1 %v26_v13 }
  0x3a   :  { %54 = vmatpush.xpose.msra.mxu0 %v25_v14  ;;  %98 = vmatpush.xpose.msra.mxu1 %v25_v14 }
  0x3e   :  { %55 = vmatpush.xpose.msra.mxu0 %v24_v15  ;;  %99 = vmatpush.xpose.msra.mxu1 %v24_v15 }
  0x41   :  { %56 = vmatmul.f32.vlgmr.msra.gmra.mxu0 %v22_v16  ;;  %59 = vmatmul.f32.vlgmr.msra.gmra.mxu1 %v23_v17 }
  0xbe   :  { %v57_v19 = vpop.f32.mrf.mxu0  ;;  %v60_v20 = vpop.f32.mrf.mxu1 }
  0xbf   :  { %v76_v21 = vadd.f32 %v100_v18, %v57_v19  ;;  %v77_v22 = vadd.f32 %v100_v18, %v60_v20 }
  0xc1   :  { %78 = vst [vmem:[%s187_s3] sm:$0xff] %v76_v21 }
  0xc2   :  { %79 = vst [vmem:[%s187_s3 + $0x8] sm:$0xff] %v77_v22 }

</bundles_post_ra>
